<compile_context>
chip_gen: v6e
topology: v6e:2x2x1
jax: 0.10.0
libtpu: 0.0.40
codegen_flags: <defaults>
</compile_context>

<pallas_src>
import numpy as np
import jax
import jax.numpy as jnp
from jax.experimental import pallas as pl
from jax.experimental.pallas import tpu as pltpu


def _round_up(x, m):
    return ((x + m - 1) // m) * m


def _make_psd_kernel(nseg, nstride, nperseg, fpad, precision):
    split = (precision == "bf16x3")

    def _accumulate(x_hi, x_lo, d_hi, d_lo):
        acc = None
        for s in range(nseg):
            # Static slice of the row slab -> (TB, nperseg); no concat copy.
            a = x_hi[:, s * nstride: s * nstride + nperseg]
            ft = jnp.dot(a, d_hi, preferred_element_type=jnp.float32)
            if split:
                b = x_lo[:, s * nstride: s * nstride + nperseg]
                ft = ft + jnp.dot(b, d_hi, preferred_element_type=jnp.float32)
                ft = ft + jnp.dot(a, d_lo, preferred_element_type=jnp.float32)
            re = ft[:, :fpad]
            im = ft[:, fpad:]
            p = re * re + im * im
            acc = p if acc is None else acc + p
        return acc

    if split:
        def kernel(x_ref, dhi_ref, dlo_ref, mask_ref, o_ref):
            x = x_ref[...]                                     # (TB, T) f32
            # bf16 hi/lo split of the whole slab once (segments overlap).
            x_hi = x.astype(jnp.bfloat16)
            x_lo = (x - x_hi.astype(jnp.float32)).astype(jnp.bfloat16)
            acc = _accumulate(x_hi, x_lo, dhi_ref[...], dlo_ref[...])
            # one-sided doubling * scale * 1/nseg applied once, post-reduction
            o_ref[...] = acc * mask_ref[...]
    else:
        def kernel(x_ref, dft_ref, mask_ref, o_ref):
            x = x_ref[...]
            if precision == "bfloat16":
                x = x.astype(jnp.bfloat16)
            acc = _accumulate(x, None, dft_ref[...], None)
            o_ref[...] = acc * mask_ref[...]

    return kernel


class SpectralDensity:
    def __init__(self, sample_rate, fftlength, overlap=None, average="mean",
                 fast=False, precision="bf16x3"):
        if overlap is None:
            overlap = fftlength / 2
        elif overlap >= fftlength:
            raise ValueError(
                "Can't have overlap {} longer than fftlength {}".format(
                    overlap, fftlength))
        if average not in ("mean", "median"):
            raise ValueError(
                f'average must be "mean" or "median", got {average} instead')
        if average == "median":
            # TODO(synk): median averaging (torch.quantile + median bias
            # correction) has no clean Pallas equivalent; only "mean" here.
            raise NotImplementedError
        if precision not in ("float32", "bfloat16", "bf16x3"):
            raise ValueError(f"bad precision {precision}")
        self.average = average
        self.fast = fast
        self.precision = precision

        self.nperseg = int(fftlength * sample_rate)
        self.nstride = self.nperseg - int(overlap * sample_rate)

        # torch.hann_window (periodic=True): 0.5*(1 - cos(2*pi*n/N)), in f64.
        n = np.arange(self.nperseg, dtype=np.float64)
        w = 0.5 * (1.0 - np.cos(2.0 * np.pi * n / self.nperseg))
        self.window = jnp.asarray(w, dtype=jnp.float32)
        self.scale = float(1.0 / (sample_rate * np.sum(w * w)))

        self.nfreq = self.nperseg // 2 + 1
        self.fpad = _round_up(self.nfreq, 128)

        # Fused windowed DFT matrix [w*cos | w*sin]; angles from exact integer
        # phases (n*k mod nperseg) to avoid f32 rounding at large nperseg.
        ni = np.arange(self.nperseg, dtype=np.int64)[:, None]
        ki = np.arange(self.fpad, dtype=np.int64)[None, :]
        phase = (ni * ki) % self.nperseg
        ang = 2.0 * np.pi * phase.astype(np.float64) / float(self.nperseg)
        valid = ki < self.nfreq
        cos = np.where(valid, np.cos(ang), 0.0)
        sin = np.where(valid, np.sin(ang), 0.0)
        dft = np.concatenate([w[:, None] * cos, w[:, None] * sin], axis=1)
        # Fold detrend="constant" into the matrix:
        #   (x - mean(x)) @ D == x @ (D - ones/nperseg @ colsum(D)).
        dft = dft - np.sum(dft, axis=0, keepdims=True) / float(self.nperseg)
        # TODO(synk): for nperseg >= ~1536 on v7x, tile the DFT over a K grid
        # axis (or stream it via pl.Buffered(1)/emit_pipeline) instead of
        # holding the full double-buffered matrix resident in VMEM.

        if self.precision == "float32":
            self._dfts = (jnp.asarray(dft, dtype=jnp.float32),)
        elif self.precision == "bfloat16":
            self._dfts = (jnp.asarray(dft, dtype=jnp.bfloat16),)
        else:  # bf16x3: hi/lo split of the f64 matrix
            d_hi = jnp.asarray(dft, dtype=jnp.bfloat16)
            resid = jnp.asarray(dft, dtype=jnp.float32) - d_hi.astype(jnp.float32)
            self._dfts = (d_hi, resid.astype(jnp.bfloat16))

        # one-sided doubling * scale, zero on padded lanes (1/nseg folded in
        # per call, since nseg depends on the input length).
        factor = np.full((self.fpad,), 2.0, dtype=np.float64)
        factor[0] = 1.0
        if self.nperseg % 2 == 0:
            factor[self.nfreq - 1] = 1.0
        factor[self.nfreq:] = 0.0
        self._mask_np = (factor * self.scale)[None, :].astype(np.float32)

    # ---- generation-aware VMEM / tiling ---------------------------------
    def _vmem_limit(self):
        try:
            cap = int(pltpu.get_tpu_info().vmem_capacity_bytes)
        except Exception:
            cap = 128 * 1024 * 1024
        if cap <= 64 * 1024 * 1024:        # v7x: 64 MiB physical per TC
            return 40 * 1024 * 1024
        return 96 * 1024 * 1024            # v5e / v6e: 128 MiB physical

    def _choose_tile(self, BC, T, vmem_limit):
        dft_bytes = sum(int(np.prod(d.shape)) * d.dtype.itemsize
                        for d in self._dfts)
        resident = 2 * dft_bytes + 2 * self.fpad * 4    # dbl-buffered DFT+mask
        budget = vmem_limit - resident - 4 * 1024 * 1024
        split_bytes = 2 * T * 2 if self.precision == "bf16x3" else 0
        per_row = (2 * T * 4 + split_bytes              # x slab (2 bufs)+hi/lo
                   + 2 * self.fpad * 4                  # output (2 bufs)
                   + self.nperseg * 8 + self.fpad * 24)  # per-seg temps
        tb_cap = max(8, (max(budget, 0) // max(per_row, 1)) // 8 * 8)
        tb = min(256, tb_cap)       # M=256 fills v6e/v7x 256-wide MXU passes
        bc_pad8 = _round_up(max(BC, 1), 8)
        tb = min(tb, bc_pad8)
        # Keep >= 2 steps on the "parallel" row axis when possible so v7x's
        # two TensorCores both get work (no-op on single-TC v5e/v6e).
        if bc_pad8 >= 16 and bc_pad8 // tb < 2:
            tb = max(8, (bc_pad8 // 2) // 8 * 8)
        bc_pad = _round_up(BC, tb)
        return tb, bc_pad

    # ---- forward ---------------------------------------------------------
    def __call__(self, x, y=None):
        if self.fast or y is not None:
            # TODO(synk): fast_spectral_density / cross-spectral (y) path not
            # implemented (module default is fast=False, y=None).
            raise NotImplementedError

        lead_shape = x.shape[:-1]
        T = x.shape[-1]
        xf = x.reshape(-1, T).astype(jnp.float32)
        BC = xf.shape[0]
        nseg = (T - self.nperseg) // self.nstride + 1
        if nseg < 1:
            raise ValueError("input too short for one fft segment")
        # TODO(synk): for very long T, stream the overlapping segment windows
        # via a segment grid axis with pl.Element offsets instead of holding
        # the full (tb, T) row slab in VMEM.

        vmem_limit = self._vmem_limit()
        tb, bc_pad = self._choose_tile(BC, T, vmem_limit)
        if bc_pad != BC:
            xf = jnp.pad(xf, ((0, bc_pad - BC), (0, 0)))

        mask = jnp.asarray(self._mask_np * (1.0 / nseg), dtype=jnp.float32)
        kernel = _make_psd_kernel(nseg, self.nstride, self.nperseg,
                                  self.fpad, self.precision)

        dft_specs = [pl.BlockSpec(tuple(d.shape), lambda i: (0, 0))
                     for d in self._dfts]

        out = pl.pallas_call(
            kernel,
            out_shape=jax.ShapeDtypeStruct((bc_pad, self.fpad), jnp.float32),
            grid_spec=pltpu.PrefetchScalarGridSpec(
                num_scalar_prefetch=0,
                grid=(bc_pad // tb,),
                in_specs=[pl.BlockSpec((tb, T), lambda i: (i, 0))]
                        + dft_specs
                        + [pl.BlockSpec((1, self.fpad), lambda i: (0, 0))],
                out_specs=pl.BlockSpec((tb, self.fpad), lambda i: (i, 0)),
            ),
            compiler_params=pltpu.CompilerParams(
                dimension_semantics=("parallel",),
                vmem_limit_bytes=vmem_limit,
            ),
        )(xf, *self._dfts, mask)

        psd = out[:BC, :self.nfreq]
        return psd.reshape(*lead_shape, self.nfreq)


def _reference_psd(x, nperseg, nstride, window, scale):
    """Pure-JAX reference matching ml4gw.spectral.spectral_density (mean)."""
    T = x.shape[-1]
    nseg = (T - nperseg) // nstride + 1
    idx = (jnp.arange(nseg) * nstride)[:, None] + jnp.arange(nperseg)[None, :]
    segs = x[..., idx]                                  # (..., nseg, nperseg)
    segs = segs - segs.mean(axis=-1, keepdims=True)
    segs = segs * window
    fft = jnp.abs(jnp.fft.rfft(segs, axis=-1)) ** 2
    if nperseg % 2:
        fft = fft.at[..., 1:].multiply(2.0)
    else:
        fft = fft.at[..., 1:-1].multiply(2.0)
    fft = fft * scale
    return fft.mean(axis=-2)


if __name__ == "__main__":
    sample_rate = 32.0
    fftlength = 2.0          # nperseg = 64, nstride = 32 (overlap = fftlength/2)
    B, C, T = 2, 4, 256      # 8 seconds of data -> 7 overlapping segments

    key = jax.random.PRNGKey(0)
    x = jax.random.normal(key, (B, C, T), dtype=jnp.float32)

    sd = SpectralDensity(sample_rate, fftlength, overlap=None,
                         average="mean", fast=False)
    psd = jax.block_until_ready(sd(x))

    assert psd.shape == (B, C, sd.nfreq), psd.shape
    assert psd.dtype == jnp.float32

    ref = jax.block_until_ready(
        _reference_psd(x, sd.nperseg, sd.nstride, sd.window, sd.scale))
    np.testing.assert_allclose(np.asarray(psd), np.asarray(ref),
                               rtol=2e-4, atol=1e-6)

    print("KERNEL_OK")
</pallas_src>

<mosaic_0001>
module attributes {stable_mosaic.version = 11 : i64} {
  func.func @kernel(%arg0: i32, %arg1: memref<8x256xf32, #tpu.memory_space<vmem>>, %arg2: memref<64x256xbf16, #tpu.memory_space<vmem>>, %arg3: memref<64x256xbf16, #tpu.memory_space<vmem>>, %arg4: memref<1x128xf32, #tpu.memory_space<vmem>>, %arg5: memref<8x128xf32, #tpu.memory_space<vmem>>) attributes {dimension_semantics = [#tpu.dimension_semantics<parallel>], iteration_bounds = array<i64: 1>, scalar_prefetch = 0 : i64, scratch_operands = 0 : i64, tpu.core_type = #tpu.core_type<tc>, window_params = [{transform_indices = @transform_0, window_bounds = array<i64: 8, 256>}, {pipeline_mode = #tpu.pipeline_mode<synchronous>, transform_indices = @transform_1, window_bounds = array<i64: 64, 256>}, {pipeline_mode = #tpu.pipeline_mode<synchronous>, transform_indices = @transform_2, window_bounds = array<i64: 64, 256>}, {pipeline_mode = #tpu.pipeline_mode<synchronous>, transform_indices = @transform_3, window_bounds = array<i64: 1, 128>}, {transform_indices = @transform_4, window_bounds = array<i64: 8, 128>}]} {
    %c0 = arith.constant 0 : index
    %c0_0 = arith.constant 0 : index
    %0 = vector.load %arg1[%c0, %c0_0] : memref<8x256xf32, #tpu.memory_space<vmem>>, vector<8x256xf32>
    %1 = arith.truncf %0 : vector<8x256xf32> to vector<8x256xbf16>
    %2 = arith.extf %1 : vector<8x256xbf16> to vector<8x256xf32>
    %3 = arith.subf %0, %2 : vector<8x256xf32>
    %4 = arith.truncf %3 : vector<8x256xf32> to vector<8x256xbf16>
    %c0_1 = arith.constant 0 : index
    %c0_2 = arith.constant 0 : index
    %5 = vector.load %arg2[%c0_1, %c0_2] : memref<64x256xbf16, #tpu.memory_space<vmem>>, vector<64x256xbf16>
    %c0_3 = arith.constant 0 : index
    %c0_4 = arith.constant 0 : index
    %6 = vector.load %arg3[%c0_3, %c0_4] : memref<64x256xbf16, #tpu.memory_space<vmem>>, vector<64x256xbf16>
    %7 = vector.extract_strided_slice %1 {offsets = [0, 0], sizes = [8, 64], strides = [1, 1]} : vector<8x256xbf16> to vector<8x64xbf16>
    %cst = arith.constant dense<0.000000e+00> : vector<8x256xf32>
    %8 = tpu.matmul %7, %5, %cst {dimension_numbers = #tpu.dot_dimension_numbers<[1], [0], [0], [1], [0, 0, 1, 1], [], []>} : vector<8x64xbf16>, vector<64x256xbf16>, vector<8x256xf32> -> vector<8x256xf32>
    %9 = vector.extract_strided_slice %4 {offsets = [0, 0], sizes = [8, 64], strides = [1, 1]} : vector<8x256xbf16> to vector<8x64xbf16>
    %cst_5 = arith.constant dense<0.000000e+00> : vector<8x256xf32>
    %10 = tpu.matmul %9, %5, %cst_5 {dimension_numbers = #tpu.dot_dimension_numbers<[1], [0], [0], [1], [0, 0, 1, 1], [], []>} : vector<8x64xbf16>, vector<64x256xbf16>, vector<8x256xf32> -> vector<8x256xf32>
    %11 = arith.addf %8, %10 : vector<8x256xf32>
    %cst_6 = arith.constant dense<0.000000e+00> : vector<8x256xf32>
    %12 = tpu.matmul %7, %6, %cst_6 {dimension_numbers = #tpu.dot_dimension_numbers<[1], [0], [0], [1], [0, 0, 1, 1], [], []>} : vector<8x64xbf16>, vector<64x256xbf16>, vector<8x256xf32> -> vector<8x256xf32>
    %13 = arith.addf %11, %12 : vector<8x256xf32>
    %14 = vector.extract_strided_slice %13 {offsets = [0, 0], sizes = [8, 128], strides = [1, 1]} : vector<8x256xf32> to vector<8x128xf32>
    %15 = vector.extract_strided_slice %13 {offsets = [0, 128], sizes = [8, 128], strides = [1, 1]} : vector<8x256xf32> to vector<8x128xf32>
    %16 = arith.mulf %14, %14 : vector<8x128xf32>
    %17 = arith.mulf %15, %15 : vector<8x128xf32>
    %18 = arith.addf %16, %17 : vector<8x128xf32>
    %19 = vector.extract_strided_slice %1 {offsets = [0, 32], sizes = [8, 64], strides = [1, 1]} : vector<8x256xbf16> to vector<8x64xbf16>
    %cst_7 = arith.constant dense<0.000000e+00> : vector<8x256xf32>
    %20 = tpu.matmul %19, %5, %cst_7 {dimension_numbers = #tpu.dot_dimension_numbers<[1], [0], [0], [1], [0, 0, 1, 1], [], []>} : vector<8x64xbf16>, vector<64x256xbf16>, vector<8x256xf32> -> vector<8x256xf32>
    %21 = vector.extract_strided_slice %4 {offsets = [0, 32], sizes = [8, 64], strides = [1, 1]} : vector<8x256xbf16> to vector<8x64xbf16>
    %cst_8 = arith.constant dense<0.000000e+00> : vector<8x256xf32>
    %22 = tpu.matmul %21, %5, %cst_8 {dimension_numbers = #tpu.dot_dimension_numbers<[1], [0], [0], [1], [0, 0, 1, 1], [], []>} : vector<8x64xbf16>, vector<64x256xbf16>, vector<8x256xf32> -> vector<8x256xf32>
    %23 = arith.addf %20, %22 : vector<8x256xf32>
    %cst_9 = arith.constant dense<0.000000e+00> : vector<8x256xf32>
    %24 = tpu.matmul %19, %6, %cst_9 {dimension_numbers = #tpu.dot_dimension_numbers<[1], [0], [0], [1], [0, 0, 1, 1], [], []>} : vector<8x64xbf16>, vector<64x256xbf16>, vector<8x256xf32> -> vector<8x256xf32>
    %25 = arith.addf %23, %24 : vector<8x256xf32>
    %26 = vector.extract_strided_slice %25 {offsets = [0, 0], sizes = [8, 128], strides = [1, 1]} : vector<8x256xf32> to vector<8x128xf32>
    %27 = vector.extract_strided_slice %25 {offsets = [0, 128], sizes = [8, 128], strides = [1, 1]} : vector<8x256xf32> to vector<8x128xf32>
    %28 = arith.mulf %26, %26 : vector<8x128xf32>
    %29 = arith.mulf %27, %27 : vector<8x128xf32>
    %30 = arith.addf %28, %29 : vector<8x128xf32>
    %31 = arith.addf %18, %30 : vector<8x128xf32>
    %32 = vector.extract_strided_slice %1 {offsets = [0, 64], sizes = [8, 64], strides = [1, 1]} : vector<8x256xbf16> to vector<8x64xbf16>
    %cst_10 = arith.constant dense<0.000000e+00> : vector<8x256xf32>
    %33 = tpu.matmul %32, %5, %cst_10 {dimension_numbers = #tpu.dot_dimension_numbers<[1], [0], [0], [1], [0, 0, 1, 1], [], []>} : vector<8x64xbf16>, vector<64x256xbf16>, vector<8x256xf32> -> vector<8x256xf32>
    %34 = vector.extract_strided_slice %4 {offsets = [0, 64], sizes = [8, 64], strides = [1, 1]} : vector<8x256xbf16> to vector<8x64xbf16>
    %cst_11 = arith.constant dense<0.000000e+00> : vector<8x256xf32>
    %35 = tpu.matmul %34, %5, %cst_11 {dimension_numbers = #tpu.dot_dimension_numbers<[1], [0], [0], [1], [0, 0, 1, 1], [], []>} : vector<8x64xbf16>, vector<64x256xbf16>, vector<8x256xf32> -> vector<8x256xf32>
    %36 = arith.addf %33, %35 : vector<8x256xf32>
    %cst_12 = arith.constant dense<0.000000e+00> : vector<8x256xf32>
    %37 = tpu.matmul %32, %6, %cst_12 {dimension_numbers = #tpu.dot_dimension_numbers<[1], [0], [0], [1], [0, 0, 1, 1], [], []>} : vector<8x64xbf16>, vector<64x256xbf16>, vector<8x256xf32> -> vector<8x256xf32>
    %38 = arith.addf %36, %37 : vector<8x256xf32>
    %39 = vector.extract_strided_slice %38 {offsets = [0, 0], sizes = [8, 128], strides = [1, 1]} : vector<8x256xf32> to vector<8x128xf32>
    %40 = vector.extract_strided_slice %38 {offsets = [0, 128], sizes = [8, 128], strides = [1, 1]} : vector<8x256xf32> to vector<8x128xf32>
    %41 = arith.mulf %39, %39 : vector<8x128xf32>
    %42 = arith.mulf %40, %40 : vector<8x128xf32>
    %43 = arith.addf %41, %42 : vector<8x128xf32>
    %44 = arith.addf %31, %43 : vector<8x128xf32>
    %45 = vector.extract_strided_slice %1 {offsets = [0, 96], sizes = [8, 64], strides = [1, 1]} : vector<8x256xbf16> to vector<8x64xbf16>
    %cst_13 = arith.constant dense<0.000000e+00> : vector<8x256xf32>
    %46 = tpu.matmul %45, %5, %cst_13 {dimension_numbers = #tpu.dot_dimension_numbers<[1], [0], [0], [1], [0, 0, 1, 1], [], []>} : vector<8x64xbf16>, vector<64x256xbf16>, vector<8x256xf32> -> vector<8x256xf32>
    %47 = vector.extract_strided_slice %4 {offsets = [0, 96], sizes = [8, 64], strides = [1, 1]} : vector<8x256xbf16> to vector<8x64xbf16>
    %cst_14 = arith.constant dense<0.000000e+00> : vector<8x256xf32>
    %48 = tpu.matmul %47, %5, %cst_14 {dimension_numbers = #tpu.dot_dimension_numbers<[1], [0], [0], [1], [0, 0, 1, 1], [], []>} : vector<8x64xbf16>, vector<64x256xbf16>, vector<8x256xf32> -> vector<8x256xf32>
    %49 = arith.addf %46, %48 : vector<8x256xf32>
    %cst_15 = arith.constant dense<0.000000e+00> : vector<8x256xf32>
    %50 = tpu.matmul %45, %6, %cst_15 {dimension_numbers = #tpu.dot_dimension_numbers<[1], [0], [0], [1], [0, 0, 1, 1], [], []>} : vector<8x64xbf16>, vector<64x256xbf16>, vector<8x256xf32> -> vector<8x256xf32>
    %51 = arith.addf %49, %50 : vector<8x256xf32>
    %52 = vector.extract_strided_slice %51 {offsets = [0, 0], sizes = [8, 128], strides = [1, 1]} : vector<8x256xf32> to vector<8x128xf32>
    %53 = vector.extract_strided_slice %51 {offsets = [0, 128], sizes = [8, 128], strides = [1, 1]} : vector<8x256xf32> to vector<8x128xf32>
    %54 = arith.mulf %52, %52 : vector<8x128xf32>
    %55 = arith.mulf %53, %53 : vector<8x128xf32>
    %56 = arith.addf %54, %55 : vector<8x128xf32>
    %57 = arith.addf %44, %56 : vector<8x128xf32>
    %58 = vector.extract_strided_slice %1 {offsets = [0, 128], sizes = [8, 64], strides = [1, 1]} : vector<8x256xbf16> to vector<8x64xbf16>
    %cst_16 = arith.constant dense<0.000000e+00> : vector<8x256xf32>
    %59 = tpu.matmul %58, %5, %cst_16 {dimension_numbers = #tpu.dot_dimension_numbers<[1], [0], [0], [1], [0, 0, 1, 1], [], []>} : vector<8x64xbf16>, vector<64x256xbf16>, vector<8x256xf32> -> vector<8x256xf32>
    %60 = vector.extract_strided_slice %4 {offsets = [0, 128], sizes = [8, 64], strides = [1, 1]} : vector<8x256xbf16> to vector<8x64xbf16>
    %cst_17 = arith.constant dense<0.000000e+00> : vector<8x256xf32>
    %61 = tpu.matmul %60, %5, %cst_17 {dimension_numbers = #tpu.dot_dimension_numbers<[1], [0], [0], [1], [0, 0, 1, 1], [], []>} : vector<8x64xbf16>, vector<64x256xbf16>, vector<8x256xf32> -> vector<8x256xf32>
    %62 = arith.addf %59, %61 : vector<8x256xf32>
    %cst_18 = arith.constant dense<0.000000e+00> : vector<8x256xf32>
    %63 = tpu.matmul %58, %6, %cst_18 {dimension_numbers = #tpu.dot_dimension_numbers<[1], [0], [0], [1], [0, 0, 1, 1], [], []>} : vector<8x64xbf16>, vector<64x256xbf16>, vector<8x256xf32> -> vector<8x256xf32>
    %64 = arith.addf %62, %63 : vector<8x256xf32>
    %65 = vector.extract_strided_slice %64 {offsets = [0, 0], sizes = [8, 128], strides = [1, 1]} : vector<8x256xf32> to vector<8x128xf32>
    %66 = vector.extract_strided_slice %64 {offsets = [0, 128], sizes = [8, 128], strides = [1, 1]} : vector<8x256xf32> to vector<8x128xf32>
    %67 = arith.mulf %65, %65 : vector<8x128xf32>
    %68 = arith.mulf %66, %66 : vector<8x128xf32>
    %69 = arith.addf %67, %68 : vector<8x128xf32>
    %70 = arith.addf %57, %69 : vector<8x128xf32>
    %71 = vector.extract_strided_slice %1 {offsets = [0, 160], sizes = [8, 64], strides = [1, 1]} : vector<8x256xbf16> to vector<8x64xbf16>
    %cst_19 = arith.constant dense<0.000000e+00> : vector<8x256xf32>
    %72 = tpu.matmul %71, %5, %cst_19 {dimension_numbers = #tpu.dot_dimension_numbers<[1], [0], [0], [1], [0, 0, 1, 1], [], []>} : vector<8x64xbf16>, vector<64x256xbf16>, vector<8x256xf32> -> vector<8x256xf32>
    %73 = vector.extract_strided_slice %4 {offsets = [0, 160], sizes = [8, 64], strides = [1, 1]} : vector<8x256xbf16> to vector<8x64xbf16>
    %cst_20 = arith.constant dense<0.000000e+00> : vector<8x256xf32>
    %74 = tpu.matmul %73, %5, %cst_20 {dimension_numbers = #tpu.dot_dimension_numbers<[1], [0], [0], [1], [0, 0, 1, 1], [], []>} : vector<8x64xbf16>, vector<64x256xbf16>, vector<8x256xf32> -> vector<8x256xf32>
    %75 = arith.addf %72, %74 : vector<8x256xf32>
    %cst_21 = arith.constant dense<0.000000e+00> : vector<8x256xf32>
    %76 = tpu.matmul %71, %6, %cst_21 {dimension_numbers = #tpu.dot_dimension_numbers<[1], [0], [0], [1], [0, 0, 1, 1], [], []>} : vector<8x64xbf16>, vector<64x256xbf16>, vector<8x256xf32> -> vector<8x256xf32>
    %77 = arith.addf %75, %76 : vector<8x256xf32>
    %78 = vector.extract_strided_slice %77 {offsets = [0, 0], sizes = [8, 128], strides = [1, 1]} : vector<8x256xf32> to vector<8x128xf32>
    %79 = vector.extract_strided_slice %77 {offsets = [0, 128], sizes = [8, 128], strides = [1, 1]} : vector<8x256xf32> to vector<8x128xf32>
    %80 = arith.mulf %78, %78 : vector<8x128xf32>
    %81 = arith.mulf %79, %79 : vector<8x128xf32>
    %82 = arith.addf %80, %81 : vector<8x128xf32>
    %83 = arith.addf %70, %82 : vector<8x128xf32>
    %84 = vector.extract_strided_slice %1 {offsets = [0, 192], sizes = [8, 64], strides = [1, 1]} : vector<8x256xbf16> to vector<8x64xbf16>
    %cst_22 = arith.constant dense<0.000000e+00> : vector<8x256xf32>
    %85 = tpu.matmul %84, %5, %cst_22 {dimension_numbers = #tpu.dot_dimension_numbers<[1], [0], [0], [1], [0, 0, 1, 1], [], []>} : vector<8x64xbf16>, vector<64x256xbf16>, vector<8x256xf32> -> vector<8x256xf32>
    %86 = vector.extract_strided_slice %4 {offsets = [0, 192], sizes = [8, 64], strides = [1, 1]} : vector<8x256xbf16> to vector<8x64xbf16>
    %cst_23 = arith.constant dense<0.000000e+00> : vector<8x256xf32>
    %87 = tpu.matmul %86, %5, %cst_23 {dimension_numbers = #tpu.dot_dimension_numbers<[1], [0], [0], [1], [0, 0, 1, 1], [], []>} : vector<8x64xbf16>, vector<64x256xbf16>, vector<8x256xf32> -> vector<8x256xf32>
    %88 = arith.addf %85, %87 : vector<8x256xf32>
    %cst_24 = arith.constant dense<0.000000e+00> : vector<8x256xf32>
    %89 = tpu.matmul %84, %6, %cst_24 {dimension_numbers = #tpu.dot_dimension_numbers<[1], [0], [0], [1], [0, 0, 1, 1], [], []>} : vector<8x64xbf16>, vector<64x256xbf16>, vector<8x256xf32> -> vector<8x256xf32>
    %90 = arith.addf %88, %89 : vector<8x256xf32>
    %91 = vector.extract_strided_slice %90 {offsets = [0, 0], sizes = [8, 128], strides = [1, 1]} : vector<8x256xf32> to vector<8x128xf32>
    %92 = vector.extract_strided_slice %90 {offsets = [0, 128], sizes = [8, 128], strides = [1, 1]} : vector<8x256xf32> to vector<8x128xf32>
    %93 = arith.mulf %91, %91 : vector<8x128xf32>
    %94 = arith.mulf %92, %92 : vector<8x128xf32>
    %95 = arith.addf %93, %94 : vector<8x128xf32>
    %96 = arith.addf %83, %95 : vector<8x128xf32>
    %c0_25 = arith.constant 0 : index
    %c0_26 = arith.constant 0 : index
    %97 = vector.load %arg4[%c0_25, %c0_26] : memref<1x128xf32, #tpu.memory_space<vmem>>, vector<1x128xf32>
    %98 = vector.broadcast %97 : vector<1x128xf32> to vector<8x128xf32>
    %99 = arith.mulf %96, %98 : vector<8x128xf32>
    %c0_27 = arith.constant 0 : index
    %c0_28 = arith.constant 0 : index
    %100 = vector.load %arg5[%c0_27, %c0_28] : memref<8x128xf32, #tpu.memory_space<vmem>>, vector<8x128xf32>
    tpu.vector_store %arg5[%c0_27, %c0_28], %99 {strides = array<i32>} : memref<8x128xf32, #tpu.memory_space<vmem>>, vector<8x128xf32>,
    return
  }
  func.func @transform_0(%arg0: i32) -> (i32, i32) {
    %c0_i32 = arith.constant 0 : i32
    %c0_i32_0 = arith.constant 0 : i32
    return %arg0, %c0_i32 : i32, i32
  }
  func.func @transform_1(%arg0: i32) -> (i32, i32) {
    %c0_i32 = arith.constant 0 : i32
    %c0_i32_0 = arith.constant 0 : i32
    %c0_i32_1 = arith.constant 0 : i32
    return %c0_i32, %c0_i32_0 : i32, i32
  }
  func.func @transform_2(%arg0: i32) -> (i32, i32) {
    %c0_i32 = arith.constant 0 : i32
    %c0_i32_0 = arith.constant 0 : i32
    %c0_i32_1 = arith.constant 0 : i32
    return %c0_i32, %c0_i32_0 : i32, i32
  }
  func.func @transform_3(%arg0: i32) -> (i32, i32) {
    %c0_i32 = arith.constant 0 : i32
    %c0_i32_0 = arith.constant 0 : i32
    %c0_i32_1 = arith.constant 0 : i32
    return %c0_i32, %c0_i32_0 : i32, i32
  }
  func.func @transform_4(%arg0: i32) -> (i32, i32) {
    %c0_i32 = arith.constant 0 : i32
    %c0_i32_0 = arith.constant 0 : i32
    return %arg0, %c0_i32 : i32, i32
  }
}

</mosaic_0001>

<bundles_post_ra>
// kernel: tpu_custom_call.1
= control target key start
LH: loop header
LB: loop body
LE: loop exit
PB: predicated region body
PF: predicated region fallthrough
CT: control target
= control target key end

     0   :  { %9 = vsyncpa [#allocation3], 0  ;;  %s1645_s0 = inlined_call_operand.hbm [shape: f32[8,256], index: 0, kind: input, shape index: {}]   ;;  %s1646_s1 = inlined_call_operand.hbm [shape: bf16[64,256], index: 1, kind: input, shape index: {}]   ;;  %s1647_s2 = inlined_call_operand.hbm [shape: bf16[64,256], index: 2, kind: input, shape index: {}]   ;;  %s1648_s3 = inlined_call_operand.vmem [shape: f32[1,128], index: 3, kind: input, shape index: {}]   ;;  %s1649_s4 = inlined_call_operand.hbm [shape: f32[8,128], index: 4, kind: output, shape index: {}]  }
   0x1   :  { %10 = vsyncpa [#allocation6], 0 }
   0x2   :  { %11 = vsyncpa [#allocation4], 0  ;;  %s1323_s15 = smov [#allocation5]  }
   0x3   :  { %s27_s16 = sshll.u32 %s1323_s15, 4  ;;  %s28_s16 = int_to_ptr.vmem [resolvable:$true] %s27_s16 }
   0x4   :  { %s1245_s17 = scalar_lea.vmem %s28_s16, 1024  ;;  %p1250_p1 = scmp.lt.s32.totalorder %s28_s16, %s28_s16 }
   0x5   :  { %p1246_p0 = scmp.ne.s32.totalorder %s28_s16, %s1245_s17  ;;  %p1251_p2 = scmp.lt.s32.totalorder %s1245_s17, %s1245_s17 }
   0x7   :  { %p1252_p3 = por %p1251_p2, %p1250_p1 }
   0x9   :  { %p1253_p4 = pnand %p1252_p3, %p1246_p0 }
   0xb   :  { %1256 = shalt.err (!%p1253_p4)
}
   0xc   :  { %s1324_s18 = smov 128   ;;  %s1325_s19 = smov 8  }
   0xd   :  { %33 = dma.hbm_to_vmem [thread:$0]  %s1646_s1, 1024, %s28_s16, [#allocation6], %s1324_s18, %s1324_s18, %s1325_s19  }
   0xe   :  { %s1326_s22 = smov [#allocation2]   ;;  %s1327_s24 = smov [#allocation7]  }
   0xf   :  { %s18_s23 = sshll.u32 %s1326_s22, 4  ;;  %s39_s25 = sshll.u32 %s1327_s24, 4  ;;  %s19_s23 = int_to_ptr.vmem [resolvable:$true] %s18_s23  ;;  %s40_s25 = int_to_ptr.vmem [resolvable:$true] %s39_s25 }
  0x10   :  { %s1265_s26 = scalar_lea.vmem %s19_s23, 256  ;;  %p1270_p6 = scmp.lt.s32.totalorder %s19_s23, %s19_s23 }
  0x11   :  { %p1266_p5 = scmp.ne.s32.totalorder %s19_s23, %s1265_s26  ;;  %p1271_p7 = scmp.lt.s32.totalorder %s1265_s26, %s1265_s26 }
  0x13   :  { %p1272_p8 = por %p1271_p7, %p1270_p6 }
  0x15   :  { %p1273_p9 = pnand %p1272_p8, %p1266_p5 }
  0x17   :  { %1276 = shalt.err (!%p1273_p9)
}
  0x18   :  { %21 = dma.hbm_to_vmem [thread:$0]  %s1645_s0, 256, %s19_s23, [#allocation3]  }
  0x19   :  { %s1285_s29 = scalar_lea.vmem %s40_s25, 1024  ;;  %p1290_p11 = scmp.lt.s32.totalorder %s40_s25, %s40_s25 }
  0x1a   :  { %p1286_p10 = scmp.ne.s32.totalorder %s40_s25, %s1285_s29  ;;  %p1291_p12 = scmp.lt.s32.totalorder %s1285_s29, %s1285_s29 }
  0x1c   :  { %p1292_p13 = por %p1291_p12, %p1290_p11 }
  0x1e   :  { %p1293_p0 = pnand %p1292_p13, %p1286_p10 }
  0x20   :  { %1296 = shalt.err (!%p1293_p0)
}
  0x21   :  { %45 = dma.hbm_to_vmem [thread:$0]  %s1647_s2, 1024, %s40_s25, [#allocation6], %s1324_s18, %s1324_s18, %s1325_s19  }
  0x22   :  { %1317 = dma.done.wait [#allocation3], 256  }
  0x23   :  { %1318 = vsyncadd [#allocation3], 4294967040 }
  0x24   :  { %1319 = dma.done.wait [#allocation6], 2048  }
  0x25   :  { %1320 = vsyncadd [#allocation6], 4294965248  ;;  %v1328_v0 = vmov 0   ;;  %v58_v1 = vld [vmem:[#allocation2] sm:$0xff]  ;;  %v59_v2 = vld [vmem:[#allocation2 + $0x8] sm:$0xff]  ;;  %s1329_s0 = smov 96  }
  0x26   :  { %160 = vmatprep.mubr.bf16.mxu0 %v1328_v0  ;;  %204 = vmatprep.mubr.bf16.mxu1 %v1328_v0  ;;  %v1369_v3 = vpack.c.bf16 %v58_v1, %v58_v1  ;;  %v1371_v4 = vpack.c.bf16 %v59_v2, %v59_v2  ;;  %v1373_v5 = vld [vmem:[#allocation5 + $0x34] ss:$8 sps:$4 sm:$0xff]   ;;  %v1375_v6 = vld [vmem:[#allocation5 + $0x30] ss:$8 sps:$4 sm:$0xff]   ;;  %v1377_v7 = vld [vmem:[#allocation5 + $0x24] ss:$8 sps:$4 sm:$0xff]  }
  0x27   :  { %136 = vmatprep.subr.bf16.mxu0 %v1373_v5  ;;  %180 = vmatprep.subr.bf16.mxu1 %v1373_v5  ;;  %v1383_v9 = vld [vmem:[#allocation5 + $0x20] ss:$8 sps:$4 sm:$0xff]   ;;  %v1389_v12 = vld [vmem:[#allocation5 + $0x14] ss:$8 sps:$4 sm:$0xff]   ;;  %v1392_v14 = vld [vmem:[#allocation5 + $0x10] ss:$8 sps:$4 sm:$0xff]  }
  0x28   :  { %v62_v8 = vunpack.c.l.bf16 %v1369_v3  ;;  %137 = vmatpush1.bf16.msra.mxu0 %v1375_v6  ;;  %181 = vmatpush1.bf16.msra.mxu1 %v1375_v6  ;;  %v63_v11 = vunpack.c.l.bf16 %v1371_v4  ;;  %s1330_s2 = smov 64   ;;  %v1398_v16 = vld [vmem:[#allocation5 + $0x4] ss:$8 sps:$4 sm:$0xff]   ;;  %v1402_v17 = vld [vmem:[#allocation5] ss:$8 sps:$4 sm:$0xff]   ;;  %vm124_vm0 = vcmask 523264  }
  0x29   :  { %138 = vmatprep.subr.bf16.mxu0 %v1377_v7  ;;  %182 = vmatprep.subr.bf16.mxu1 %v1377_v7  ;;  %v1412_v19 = vld [vmem:[#allocation7 + $0x34] ss:$8 sps:$4 sm:$0xff]   ;;  %v1416_v20 = vld [vmem:[#allocation7 + $0x30] ss:$8 sps:$4 sm:$0xff]   ;;  %s1331_s5 = smov 32   ;;  %vm584_vm1 = vcmask 261120  }
  0x2a   :  { %v64_v10 = vsub.f32 %v58_v1, %v62_v8  ;;  %v65_v15 = vsub.f32 %v59_v2, %v63_v11  ;;  %v1421_v21 = vld [vmem:[#allocation7 + $0x24] ss:$8 sps:$4 sm:$0xff]   ;;  %v1428_v22 = vld [vmem:[#allocation7 + $0x20] ss:$8 sps:$4 sm:$0xff]   ;;  %v1433_v23 = vld [vmem:[#allocation7 + $0x14] ss:$8 sps:$4 sm:$0xff]  }
  0x2b   :  { %v1440_v24 = vld [vmem:[#allocation7 + $0x10] ss:$8 sps:$4 sm:$0xff]   ;;  %v1443_v25 = vld [vmem:[#allocation7 + $0x4] ss:$8 sps:$4 sm:$0xff]   ;;  %v1452_v26 = vld [vmem:[#allocation7] ss:$8 sps:$4 sm:$0xff]  }
  0x2c   :  { %v66_v13 = vpack.c.bf16 %v64_v10, %v64_v10  ;;  %139 = vmatpush1.bf16.msra.mxu0 %v1383_v9  ;;  %183 = vmatpush1.bf16.msra.mxu1 %v1383_v9  ;;  %v1409_v18 = vpack.c.bf16 %v65_v15, %v65_v15  ;;  %s1332_s8 = smov [#allocation8]  }
  0x2d   :  { %140 = vmatprep.subr.bf16.mxu0 %v1389_v12  ;;  %184 = vmatprep.subr.bf16.mxu1 %v1389_v12  ;;  %s1155_s9 = sshll.u32 %s1332_s8, 4  ;;  %s1156_s9 = int_to_ptr.vmem [resolvable:$true] %s1155_s9 }
  0x2e   :  { %300 = vrot.lane.b32.xlu0 %v66_v13, %s1329_s0  ;;  %440 = vrot.lane.b32.xlu1 %v66_v13, %s1330_s2  ;;  %s1297_s10 = scalar_lea.vmem %s1156_s9, 128  ;;  %p1302_p2 = scmp.lt.s32.totalorder %s1156_s9, %s1156_s9 }
  0x2f   :  { %p1298_p1 = scmp.ne.s32.totalorder %s1156_s9, %s1297_s10  ;;  %p1303_p3 = scmp.lt.s32.totalorder %s1297_s10, %s1297_s10 }
  0x30   :  { %141 = vmatpush1.bf16.msra.mxu0 %v1392_v14  ;;  %185 = vmatpush1.bf16.msra.mxu1 %v1392_v14 }
  0x31   :  { %142 = vmatprep.subr.bf16.mxu0 %v1398_v16  ;;  %186 = vmatprep.subr.bf16.mxu1 %v1398_v16  ;;  %p1304_p4 = por %p1303_p3, %p1302_p2 }
  0x32   :  { %347 = vrot.lane.b32.xlu0 %v1369_v3, %s1329_s0  ;;  %486 = vrot.lane.b32.xlu1 %v1369_v3, %s1330_s2 }
  0x33   :  { %p1305_p5 = pnand %p1304_p4, %p1298_p1 }
  0x34   :  { %143 = vmatpush1.bf16.msra.mxu0 %v1402_v17  ;;  %187 = vmatpush1.bf16.msra.mxu1 %v1402_v17 }
  0x35   :  { %261 = vmatprep.subr.bf16.mxu0 %v1412_v19  ;;  %313 = vmatprep.subr.bf16.mxu1 %v1373_v5 }
  0x36   :  { %582 = vrot.lane.b32.xlu1 %v1409_v18, %s1331_s5  ;;  %580 = vrot.lane.b32.xlu0 %v66_v13, %s1331_s5 }
  0x37   :  { %1173 = vmatmul.mubr.msk.bf16.vlgmr.msra.gmra.mxu0 %vm124_vm0, %v66_v13  ;;  %1174 = vmatmul.mubr.msk.bf16.vlgmr.msra.gmra.mxu1 %vm124_vm0, %v1369_v3 }
  0x38   :  { %262 = vmatpush1.bf16.msra.mxu0 %v1416_v20  ;;  %285 = vmatprep.mubr.bf16.mxu0 %v1328_v0 }
  0x39   :  { %263 = vmatprep.subr.bf16.mxu0 %v1421_v21  ;;  %314 = vmatpush1.bf16.msra.mxu1 %v1375_v6 }
  0x3a   :  { %633 = vrot.lane.b32.xlu1 %v1371_v4, %s1331_s5  ;;  %631 = vrot.lane.b32.xlu0 %v1369_v3, %s1331_s5 }
  0x3b   :  { %315 = vmatprep.subr.bf16.mxu1 %v1377_v7  ;;  %337 = vmatprep.mubr.bf16.mxu1 %v1328_v0 }
  0x3c   :  { %264 = vmatpush1.bf16.msra.mxu0 %v1428_v22 }
  0x3d   :  { %265 = vmatprep.subr.bf16.mxu0 %v1433_v23  ;;  %316 = vmatpush1.bf16.msra.mxu1 %v1383_v9 }
  0x3e   :  { %862 = vrot.lane.b32.xlu0 %v1409_v18, %s1329_s0  ;;  %908 = vrot.lane.b32.xlu1 %v1371_v4, %s1329_s0 }
  0x3f   :  { %317 = vmatprep.subr.bf16.mxu1 %v1389_v12 }
  0x40   :  { %266 = vmatpush1.bf16.msra.mxu0 %v1440_v24 }
  0x41   :  { %267 = vmatprep.subr.bf16.mxu0 %v1443_v25  ;;  %318 = vmatpush1.bf16.msra.mxu1 %v1392_v14 }
  0x42   :  { %1001 = vrot.lane.b32.xlu0 %v1409_v18, %s1330_s2  ;;  %1047 = vrot.lane.b32.xlu1 %v1371_v4, %s1330_s2 }
  0x43   :  { %319 = vmatprep.subr.bf16.mxu1 %v1398_v16 }
  0x44   :  { %268 = vmatpush1.bf16.msra.mxu0 %v1452_v26 }
  0x45   :  { %360 = vmatprep.subr.bf16.mxu0 %v1373_v5  ;;  %320 = vmatpush1.bf16.msra.mxu1 %v1402_v17 }
  0x46   :  { %401 = vmatprep.subr.bf16.mxu1 %v1412_v19 }
  0x47   :  { %1183 = vmatmul.mubr.msk.bf16.vlgmr.msra.gmra.mxu0 %vm124_vm0, %v1369_v3 }
  0x48   :  { %361 = vmatpush1.bf16.msra.mxu0 %v1375_v6  ;;  %384 = vmatprep.mubr.bf16.mxu0 %v1328_v0 }
  0x49   :  { %362 = vmatprep.subr.bf16.mxu0 %v1377_v7 }
  0x4c   :  { %363 = vmatpush1.bf16.msra.mxu0 %v1383_v9 }
  0x4d   :  { %364 = vmatprep.subr.bf16.mxu0 %v1389_v12 }
  0x50   :  { %365 = vmatpush1.bf16.msra.mxu0 %v1392_v14 }
  0x51   :  { %366 = vmatprep.subr.bf16.mxu0 %v1398_v16 }
  0x54   :  { %367 = vmatpush1.bf16.msra.mxu0 %v1402_v17 }
  0x55   :  { %453 = vmatprep.subr.bf16.mxu0 %v1373_v5 }
  0xa0   :  { %v301_v27 = vpop.permute.xlu0 %300  ;;  %v441_v29 = vpop.permute.xlu1 %440 }
  0xa1   :  { %1184 = vmatmul.mubr.msk.bf16.vlgmr.msra.gmra.mxu1 %vm124_vm0, %v301_v27 }
  0xa2   :  { %402 = vmatpush1.bf16.msra.mxu1 %v1416_v20  ;;  %425 = vmatprep.mubr.bf16.mxu1 %v1328_v0 }
  0xa3   :  { %403 = vmatprep.subr.bf16.mxu1 %v1421_v21 }
  0xa4   :  { %v348_v28 = vpop.permute.xlu0 %347  ;;  %v487_v30 = vpop.permute.xlu1 %486 }
  0xa5   :  { %1185 = vmatmul.mubr.msk.bf16.vlgmr.msra.gmra.mxu0 %vm124_vm0, %v348_v28 }
  0xa6   :  { %404 = vmatpush1.bf16.msra.mxu1 %v1428_v22  ;;  %454 = vmatpush1.bf16.msra.mxu0 %v1375_v6 }
  0xa7   :  { %405 = vmatprep.subr.bf16.mxu1 %v1433_v23  ;;  %455 = vmatprep.subr.bf16.mxu0 %v1377_v7 }
  0xa8   :  { %477 = vmatprep.mubr.bf16.mxu0 %v1328_v0  ;;  %v583_v31 = vpop.permute.xlu1 %582  ;;  %v581_v32 = vpop.permute.xlu0 %580 }
  0xa9   :  { %v585_v33 = vsel %vm584_vm1, %v581_v32, %v583_v31 }
  0xaa   :  { %406 = vmatpush1.bf16.msra.mxu1 %v1440_v24  ;;  %456 = vmatpush1.bf16.msra.mxu0 %v1383_v9 }
  0xab   :  { %407 = vmatprep.subr.bf16.mxu1 %v1443_v25  ;;  %457 = vmatprep.subr.bf16.mxu0 %v1389_v12 }
  0xac   :  { %v634_v34 = vpop.permute.xlu1 %633  ;;  %v632_v35 = vpop.permute.xlu0 %631 }
  0xad   :  { %v635_v36 = vsel %vm584_vm1, %v632_v35, %v634_v34 }
  0xae   :  { %408 = vmatpush1.bf16.msra.mxu1 %v1452_v26  ;;  %458 = vmatpush1.bf16.msra.mxu0 %v1392_v14 }
  0xaf   :  { %459 = vmatprep.subr.bf16.mxu0 %v1398_v16  ;;  %499 = vmatprep.subr.bf16.mxu1 %v1373_v5 }
  0xb0   :  { %v863_v45 = vpop.permute.xlu0 %862  ;;  %v909_v48 = vpop.permute.xlu1 %908 }
  0xb1   :  { %1186 = vmatmul.mubr.msk.bf16.vlgmr.msra.gmra.mxu1 %vm124_vm0, %v348_v28 }
  0xb2   :  { %460 = vmatpush1.bf16.msra.mxu0 %v1402_v17  ;;  %500 = vmatpush1.bf16.msra.mxu1 %v1375_v6 }
  0xb3   :  { %501 = vmatprep.subr.bf16.mxu1 %v1377_v7  ;;  %540 = vmatprep.subr.bf16.mxu0 %v1412_v19 }
  0xb4   :  { %523 = vmatprep.mubr.bf16.mxu1 %v1328_v0  ;;  %v1002_v58 = vpop.permute.xlu0 %1001  ;;  %v1048_v59 = vpop.permute.xlu1 %1047 }
  0xb5   :  { %1187 = vmatmul.mubr.msk.bf16.vlgmr.msra.gmra.mxu0 %vm124_vm0, %v441_v29 }
  0xb6   :  { %502 = vmatpush1.bf16.msra.mxu1 %v1383_v9  ;;  %541 = vmatpush1.bf16.msra.mxu0 %v1416_v20 }
  0xb7   :  { %503 = vmatprep.subr.bf16.mxu1 %v1389_v12  ;;  %542 = vmatprep.subr.bf16.mxu0 %v1421_v21 }
  0xb8   :  { %564 = vmatprep.mubr.bf16.mxu0 %v1328_v0 }
  0xba   :  { %504 = vmatpush1.bf16.msra.mxu1 %v1392_v14  ;;  %543 = vmatpush1.bf16.msra.mxu0 %v1428_v22 }
  0xbb   :  { %505 = vmatprep.subr.bf16.mxu1 %v1398_v16  ;;  %544 = vmatprep.subr.bf16.mxu0 %v1433_v23 }
  0xbe   :  { %506 = vmatpush1.bf16.msra.mxu1 %v1402_v17  ;;  %545 = vmatpush1.bf16.msra.mxu0 %v1440_v24 }
  0xbf   :  { %546 = vmatprep.subr.bf16.mxu0 %v1443_v25  ;;  %597 = vmatprep.subr.bf16.mxu1 %v1373_v5 }
  0xc1   :  { %1188 = vmatmul.mubr.msk.bf16.vlgmr.msra.gmra.mxu1 %vm124_vm0, %v487_v30 }
  0xc2   :  { %547 = vmatpush1.bf16.msra.mxu0 %v1452_v26  ;;  %598 = vmatpush1.bf16.msra.mxu1 %v1375_v6 }
  0xc3   :  { %599 = vmatprep.subr.bf16.mxu1 %v1377_v7  ;;  %647 = vmatprep.subr.bf16.mxu0 %v1373_v5 }
  0xc4   :  { %621 = vmatprep.mubr.bf16.mxu1 %v1328_v0 }
  0xc5   :  { %1189 = vmatmul.mubr.msk.bf16.vlgmr.msra.gmra.mxu0 %vm124_vm0, %v487_v30 }
  0xc6   :  { %600 = vmatpush1.bf16.msra.mxu1 %v1383_v9  ;;  %648 = vmatpush1.bf16.msra.mxu0 %v1375_v6 }
  0xc7   :  { %601 = vmatprep.subr.bf16.mxu1 %v1389_v12  ;;  %649 = vmatprep.subr.bf16.mxu0 %v1377_v7 }
  0xc8   :  { %671 = vmatprep.mubr.bf16.mxu0 %v1328_v0 }
  0xca   :  { %602 = vmatpush1.bf16.msra.mxu1 %v1392_v14  ;;  %650 = vmatpush1.bf16.msra.mxu0 %v1383_v9 }
  0xcb   :  { %603 = vmatprep.subr.bf16.mxu1 %v1398_v16  ;;  %651 = vmatprep.subr.bf16.mxu0 %v1389_v12 }
  0xce   :  { %604 = vmatpush1.bf16.msra.mxu1 %v1402_v17  ;;  %652 = vmatpush1.bf16.msra.mxu0 %v1392_v14 }
  0xcf   :  { %653 = vmatprep.subr.bf16.mxu0 %v1398_v16  ;;  %688 = vmatprep.subr.bf16.mxu1 %v1412_v19 }
  0xd1   :  { %1190 = vmatmul.mubr.msk.bf16.vlgmr.msra.gmra.mxu1 %vm124_vm0, %v585_v33 }
  0xd2   :  { %654 = vmatpush1.bf16.msra.mxu0 %v1402_v17  ;;  %689 = vmatpush1.bf16.msra.mxu1 %v1416_v20 }
  0xd3   :  { %690 = vmatprep.subr.bf16.mxu1 %v1421_v21  ;;  %738 = vmatprep.subr.bf16.mxu0 %v1373_v5 }
  0xd4   :  { %712 = vmatprep.mubr.bf16.mxu1 %v1328_v0 }
  0xd5   :  { %1191 = vmatmul.mubr.msk.bf16.vlgmr.msra.gmra.mxu0 %vm124_vm0, %v635_v36 }
  0xd6   :  { %691 = vmatpush1.bf16.msra.mxu1 %v1428_v22  ;;  %739 = vmatpush1.bf16.msra.mxu0 %v1375_v6 }
  0xd7   :  { %692 = vmatprep.subr.bf16.mxu1 %v1433_v23  ;;  %740 = vmatprep.subr.bf16.mxu0 %v1377_v7 }
  0xd8   :  { %762 = vmatprep.mubr.bf16.mxu0 %v1328_v0 }
  0xda   :  { %693 = vmatpush1.bf16.msra.mxu1 %v1440_v24  ;;  %741 = vmatpush1.bf16.msra.mxu0 %v1383_v9 }
  0xdb   :  { %694 = vmatprep.subr.bf16.mxu1 %v1443_v25  ;;  %742 = vmatprep.subr.bf16.mxu0 %v1389_v12 }
  0xde   :  { %695 = vmatpush1.bf16.msra.mxu1 %v1452_v26  ;;  %743 = vmatpush1.bf16.msra.mxu0 %v1392_v14 }
  0xdf   :  { %744 = vmatprep.subr.bf16.mxu0 %v1398_v16  ;;  %782 = vmatprep.subr.bf16.mxu1 %v1373_v5 }
  0xe1   :  { %1192 = vmatmul.mubr.msk.bf16.vlgmr.msra.gmra.mxu1 %vm124_vm0, %v635_v36 }
  0xe2   :  { %745 = vmatpush1.bf16.msra.mxu0 %v1402_v17  ;;  %783 = vmatpush1.bf16.msra.mxu1 %v1375_v6 }
  0xe3   :  { %784 = vmatprep.subr.bf16.mxu1 %v1377_v7  ;;  %823 = vmatprep.subr.bf16.mxu0 %v1412_v19 }
  0xe4   :  { %806 = vmatprep.mubr.bf16.mxu1 %v1328_v0 }
  0xe5   :  { %1193 = vmatmul.mubr.msk.bf16.vlgmr.msra.gmra.mxu0 %vm124_vm0, %v1409_v18 }
  0xe6   :  { %785 = vmatpush1.bf16.msra.mxu1 %v1383_v9  ;;  %824 = vmatpush1.bf16.msra.mxu0 %v1416_v20 }
  0xe7   :  { %786 = vmatprep.subr.bf16.mxu1 %v1389_v12  ;;  %825 = vmatprep.subr.bf16.mxu0 %v1421_v21 }
  0xe8   :  { %847 = vmatprep.mubr.bf16.mxu0 %v1328_v0 }
  0xea   :  { %787 = vmatpush1.bf16.msra.mxu1 %v1392_v14  ;;  %826 = vmatpush1.bf16.msra.mxu0 %v1428_v22 }
  0xeb   :  { %788 = vmatprep.subr.bf16.mxu1 %v1398_v16  ;;  %827 = vmatprep.subr.bf16.mxu0 %v1433_v23 }
  0xee   :  { %789 = vmatpush1.bf16.msra.mxu1 %v1402_v17  ;;  %828 = vmatpush1.bf16.msra.mxu0 %v1440_v24 }
  0xef   :  { %829 = vmatprep.subr.bf16.mxu0 %v1443_v25  ;;  %875 = vmatprep.subr.bf16.mxu1 %v1373_v5 }
  0xf1   :  { %1194 = vmatmul.mubr.msk.bf16.vlgmr.msra.gmra.mxu1 %vm124_vm0, %v1371_v4 }
  0xf2   :  { %830 = vmatpush1.bf16.msra.mxu0 %v1452_v26  ;;  %876 = vmatpush1.bf16.msra.mxu1 %v1375_v6 }
  0xf3   :  { %877 = vmatprep.subr.bf16.mxu1 %v1377_v7  ;;  %921 = vmatprep.subr.bf16.mxu0 %v1373_v5 }
  0xf4   :  { %899 = vmatprep.mubr.bf16.mxu1 %v1328_v0 }
  0xf5   :  { %1195 = vmatmul.mubr.msk.bf16.vlgmr.msra.gmra.mxu0 %vm124_vm0, %v1371_v4 }
  0xf6   :  { %878 = vmatpush1.bf16.msra.mxu1 %v1383_v9  ;;  %922 = vmatpush1.bf16.msra.mxu0 %v1375_v6 }
  0xf7   :  { %879 = vmatprep.subr.bf16.mxu1 %v1389_v12  ;;  %923 = vmatprep.subr.bf16.mxu0 %v1377_v7  ;;  %v162_v37 = vpop.f32.mrf.mxu0  ;;  %v206_v38 = vpop.f32.mrf.mxu1 }
  0xf8   :  { %945 = vmatprep.mubr.bf16.mxu0 %v1328_v0  ;;  %v207_v39 = vadd.f32 %v206_v38, %v162_v37 }
  0xf9   :  { %v164_v40 = vpop.f32.mrf.mxu0  ;;  %v208_v41 = vpop.f32.mrf.mxu1 }
  0xfa   :  { %880 = vmatpush1.bf16.msra.mxu1 %v1392_v14  ;;  %924 = vmatpush1.bf16.msra.mxu0 %v1383_v9  ;;  %v209_v42 = vadd.f32 %v208_v41, %v164_v40 }
  0xfb   :  { %881 = vmatprep.subr.bf16.mxu1 %v1398_v16  ;;  %925 = vmatprep.subr.bf16.mxu0 %v1389_v12  ;;  %v166_v43 = vpop.f32.mrf.mxu0  ;;  %v210_v44 = vpop.f32.mrf.mxu1 }
  0xfd   :  { %v167_v46 = vpop.f32.mrf.mxu0  ;;  %v211_v47 = vpop.f32.mrf.mxu1 }
  0xfe   :  { %882 = vmatpush1.bf16.msra.mxu1 %v1402_v17  ;;  %926 = vmatpush1.bf16.msra.mxu0 %v1392_v14 }
  0xff   :  { %927 = vmatprep.subr.bf16.mxu0 %v1398_v16  ;;  %962 = vmatprep.subr.bf16.mxu1 %v1412_v19 }
 0x101   :  { %1196 = vmatmul.mubr.msk.bf16.vlgmr.msra.gmra.mxu1 %vm124_vm0, %v863_v45 }
 0x102   :  { %928 = vmatpush1.bf16.msra.mxu0 %v1402_v17  ;;  %963 = vmatpush1.bf16.msra.mxu1 %v1416_v20 }
 0x103   :  { %964 = vmatprep.subr.bf16.mxu1 %v1421_v21  ;;  %1014 = vmatprep.subr.bf16.mxu0 %v1373_v5 }
 0x104   :  { %986 = vmatprep.mubr.bf16.mxu1 %v1328_v0 }
 0x105   :  { %1197 = vmatmul.mubr.msk.bf16.vlgmr.msra.gmra.mxu0 %vm124_vm0, %v909_v48 }
 0x106   :  { %965 = vmatpush1.bf16.msra.mxu1 %v1428_v22  ;;  %1015 = vmatpush1.bf16.msra.mxu0 %v1375_v6 }
 0x107   :  { %966 = vmatprep.subr.bf16.mxu1 %v1433_v23  ;;  %1016 = vmatprep.subr.bf16.mxu0 %v1377_v7  ;;  %v287_v49 = vpop.f32.mrf.mxu0 }
 0x108   :  { %1038 = vmatprep.mubr.bf16.mxu0 %v1328_v0  ;;  %v294_v50 = vadd.f32 %v287_v49, %v207_v39 }
 0x109   :  { %v289_v51 = vpop.f32.mrf.mxu0 }
 0x10a   :  { %967 = vmatpush1.bf16.msra.mxu1 %v1440_v24  ;;  %1017 = vmatpush1.bf16.msra.mxu0 %v1383_v9  ;;  %v296_v52 = vmul.f32 %v294_v50, %v294_v50  ;;  %v295_v53 = vadd.f32 %v289_v51, %v209_v42 }
 0x10b   :  { %968 = vmatprep.subr.bf16.mxu1 %v1443_v25  ;;  %1018 = vmatprep.subr.bf16.mxu0 %v1389_v12  ;;  %v291_v54 = vpop.f32.mrf.mxu0 }
 0x10c   :  { %v297_v55 = vmul.f32 %v295_v53, %v295_v53 }
 0x10d   :  { %v292_v56 = vpop.f32.mrf.mxu0 }
 0x10e   :  { %969 = vmatpush1.bf16.msra.mxu1 %v1452_v26  ;;  %1019 = vmatpush1.bf16.msra.mxu0 %v1392_v14  ;;  %v298_v57 = vadd.f32 %v297_v55, %v296_v52 }
 0x10f   :  { %1020 = vmatprep.subr.bf16.mxu0 %v1398_v16  ;;  %1060 = vmatprep.subr.bf16.mxu1 %v1373_v5 }
 0x111   :  { %1198 = vmatmul.mubr.msk.bf16.vlgmr.msra.gmra.mxu1 %vm124_vm0, %v909_v48 }
 0x112   :  { %1021 = vmatpush1.bf16.msra.mxu0 %v1402_v17  ;;  %1061 = vmatpush1.bf16.msra.mxu1 %v1375_v6 }
 0x113   :  { %1062 = vmatprep.subr.bf16.mxu1 %v1377_v7  ;;  %1101 = vmatprep.subr.bf16.mxu0 %v1412_v19 }
 0x114   :  { %1084 = vmatprep.mubr.bf16.mxu1 %v1328_v0 }
 0x115   :  { %1199 = vmatmul.mubr.msk.bf16.vlgmr.msra.gmra.mxu0 %vm124_vm0, %v1002_v58 }
 0x116   :  { %1063 = vmatpush1.bf16.msra.mxu1 %v1383_v9  ;;  %1102 = vmatpush1.bf16.msra.mxu0 %v1416_v20 }
 0x117   :  { %1064 = vmatprep.subr.bf16.mxu1 %v1389_v12  ;;  %1103 = vmatprep.subr.bf16.mxu0 %v1421_v21 }
 0x118   :  { %1125 = vmatprep.mubr.bf16.mxu0 %v1328_v0 }
 0x11a   :  { %1065 = vmatpush1.bf16.msra.mxu1 %v1392_v14  ;;  %1104 = vmatpush1.bf16.msra.mxu0 %v1428_v22 }
 0x11b   :  { %1066 = vmatprep.subr.bf16.mxu1 %v1398_v16  ;;  %1105 = vmatprep.subr.bf16.mxu0 %v1433_v23 }
 0x11e   :  { %1067 = vmatpush1.bf16.msra.mxu1 %v1402_v17  ;;  %1106 = vmatpush1.bf16.msra.mxu0 %v1440_v24 }
 0x11f   :  { %1107 = vmatprep.subr.bf16.mxu0 %v1443_v25 }
 0x121   :  { %1200 = vmatmul.mubr.msk.bf16.vlgmr.msra.gmra.mxu1 %vm124_vm0, %v1048_v59 }
 0x122   :  { %1108 = vmatpush1.bf16.msra.mxu0 %v1452_v26 }
 0x125   :  { %1201 = vmatmul.mubr.msk.bf16.vlgmr.msra.gmra.mxu0 %vm124_vm0, %v1048_v59 }
 0x161   :  { %v339_v60 = vpop.f32.mrf.mxu1 }
 0x163   :  { %v341_v61 = vpop.f32.mrf.mxu1 }
 0x165   :  { %v343_v62 = vpop.f32.mrf.mxu1  ;;  %v386_v63 = vpop.f32.mrf.mxu0 }
 0x166   :  { %v387_v0 = vadd.f32 %v386_v63, %v339_v60 }
 0x167   :  { %v344_v1 = vpop.f32.mrf.mxu1  ;;  %v388_v2 = vpop.f32.mrf.mxu0 }
 0x168   :  { %v389_v3 = vadd.f32 %v388_v2, %v341_v61 }
 0x169   :  { %v390_v4 = vpop.f32.mrf.mxu0 }
 0x16b   :  { %v391_v5 = vpop.f32.mrf.mxu0 }
 0x171   :  { %v427_v6 = vpop.f32.mrf.mxu1 }
 0x172   :  { %v434_v7 = vadd.f32 %v427_v6, %v387_v0 }
 0x173   :  { %v429_v8 = vpop.f32.mrf.mxu1 }
 0x174   :  { %v435_v9 = vadd.f32 %v429_v8, %v389_v3  ;;  %v436_v12 = vmul.f32 %v434_v7, %v434_v7 }
 0x175   :  { %v431_v10 = vpop.f32.mrf.mxu1  ;;  %v479_v11 = vpop.f32.mrf.mxu0 }
 0x176   :  { %v437_v13 = vmul.f32 %v435_v9, %v435_v9 }
 0x177   :  { %v432_v14 = vpop.f32.mrf.mxu1  ;;  %v481_v15 = vpop.f32.mrf.mxu0 }
 0x178   :  { %v438_v16 = vadd.f32 %v437_v13, %v436_v12 }
 0x179   :  { %v483_v17 = vpop.f32.mrf.mxu0 }
 0x17a   :  { %v439_v18 = vadd.f32 %v438_v16, %v298_v57 }
 0x17b   :  { %v484_v19 = vpop.f32.mrf.mxu0 }
 0x181   :  { %v525_v20 = vpop.f32.mrf.mxu1 }
 0x182   :  { %v526_v21 = vadd.f32 %v525_v20, %v479_v11 }
 0x183   :  { %v527_v22 = vpop.f32.mrf.mxu1 }
 0x184   :  { %v528_v23 = vadd.f32 %v527_v22, %v481_v15 }
 0x185   :  { %v529_v24 = vpop.f32.mrf.mxu1  ;;  %v566_v25 = vpop.f32.mrf.mxu0 }
 0x186   :  { %v573_v26 = vadd.f32 %v566_v25, %v526_v21 }
 0x187   :  { %v530_v27 = vpop.f32.mrf.mxu1  ;;  %v568_v28 = vpop.f32.mrf.mxu0 }
 0x188   :  { %v574_v29 = vadd.f32 %v568_v28, %v528_v23  ;;  %v575_v31 = vmul.f32 %v573_v26, %v573_v26 }
 0x189   :  { %v570_v30 = vpop.f32.mrf.mxu0 }
 0x18a   :  { %v576_v32 = vmul.f32 %v574_v29, %v574_v29 }
 0x18b   :  { %v571_v33 = vpop.f32.mrf.mxu0 }
 0x18c   :  { %v577_v34 = vadd.f32 %v576_v32, %v575_v31 }
 0x18e   :  { %v578_v35 = vadd.f32 %v577_v34, %v439_v18 }
 0x191   :  { %v623_v36 = vpop.f32.mrf.mxu1 }
 0x193   :  { %v625_v37 = vpop.f32.mrf.mxu1 }
 0x195   :  { %v627_v38 = vpop.f32.mrf.mxu1  ;;  %v673_v39 = vpop.f32.mrf.mxu0 }
 0x196   :  { %v674_v40 = vadd.f32 %v673_v39, %v623_v36 }
 0x197   :  { %v628_v41 = vpop.f32.mrf.mxu1  ;;  %v675_v42 = vpop.f32.mrf.mxu0 }
 0x198   :  { %v676_v43 = vadd.f32 %v675_v42, %v625_v37 }
 0x199   :  { %v677_v44 = vpop.f32.mrf.mxu0 }
 0x19b   :  { %v678_v45 = vpop.f32.mrf.mxu0 }
 0x1a1   :  { %v714_v46 = vpop.f32.mrf.mxu1 }
 0x1a2   :  { %v721_v47 = vadd.f32 %v714_v46, %v674_v40 }
 0x1a3   :  { %v716_v48 = vpop.f32.mrf.mxu1 }
 0x1a4   :  { %v722_v49 = vadd.f32 %v716_v48, %v676_v43  ;;  %v723_v52 = vmul.f32 %v721_v47, %v721_v47 }
 0x1a5   :  { %v718_v50 = vpop.f32.mrf.mxu1  ;;  %v764_v51 = vpop.f32.mrf.mxu0 }
 0x1a6   :  { %v724_v53 = vmul.f32 %v722_v49, %v722_v49 }
 0x1a7   :  { %v719_v54 = vpop.f32.mrf.mxu1  ;;  %v766_v55 = vpop.f32.mrf.mxu0 }
 0x1a8   :  { %v725_v56 = vadd.f32 %v724_v53, %v723_v52 }
 0x1a9   :  { %v768_v57 = vpop.f32.mrf.mxu0 }
 0x1aa   :  { %v726_v58 = vadd.f32 %v725_v56, %v578_v35 }
 0x1ab   :  { %v769_v59 = vpop.f32.mrf.mxu0 }
 0x1b1   :  { %v808_v60 = vpop.f32.mrf.mxu1 }
 0x1b2   :  { %v809_v21 = vadd.f32 %v808_v60, %v764_v51  ;;  %v1202_v51 = vld [vmem:[%s1648_s3] ss:$0 sm:$0xff] }
 0x1b3   :  { %v810_v61 = vpop.f32.mrf.mxu1 }
 0x1b4   :  { %v811_v20 = vadd.f32 %v810_v61, %v766_v55 }
 0x1b5   :  { %v812_v62 = vpop.f32.mrf.mxu1  ;;  %v849_v63 = vpop.f32.mrf.mxu0 }
 0x1b6   :  { %v856_v24 = vadd.f32 %v849_v63, %v809_v21 }
 0x1b7   :  { %v813_v0 = vpop.f32.mrf.mxu1  ;;  %v851_v1 = vpop.f32.mrf.mxu0 }
 0x1b8   :  { %v857_v22 = vadd.f32 %v851_v1, %v811_v20  ;;  %v858_v31 = vmul.f32 %v856_v24, %v856_v24 }
 0x1b9   :  { %v853_v2 = vpop.f32.mrf.mxu0 }
 0x1ba   :  { %v859_v28 = vmul.f32 %v857_v22, %v857_v22 }
 0x1bb   :  { %v854_v3 = vpop.f32.mrf.mxu0 }
 0x1bc   :  { %v860_v36 = vadd.f32 %v859_v28, %v858_v31 }
 0x1be   :  { %v861_v45 = vadd.f32 %v860_v36, %v726_v58 }
 0x1c1   :  { %v901_v4 = vpop.f32.mrf.mxu1 }
 0x1c3   :  { %v903_v5 = vpop.f32.mrf.mxu1 }
 0x1c5   :  { %v905_v6 = vpop.f32.mrf.mxu1  ;;  %v947_v7 = vpop.f32.mrf.mxu0 }
 0x1c6   :  { %v948_v25 = vadd.f32 %v947_v7, %v901_v4 }
 0x1c7   :  { %v906_v8 = vpop.f32.mrf.mxu1  ;;  %v949_v9 = vpop.f32.mrf.mxu0 }
 0x1c8   :  { %v950_v23 = vadd.f32 %v949_v9, %v903_v5 }
 0x1c9   :  { %v951_v10 = vpop.f32.mrf.mxu0 }
 0x1cb   :  { %v952_v11 = vpop.f32.mrf.mxu0 }
 0x1d1   :  { %v988_v12 = vpop.f32.mrf.mxu1 }
 0x1d2   :  { %v995_v29 = vadd.f32 %v988_v12, %v948_v25 }
 0x1d3   :  { %v990_v13 = vpop.f32.mrf.mxu1 }
 0x1d4   :  { %v996_v26 = vadd.f32 %v990_v13, %v950_v23  ;;  %v997_v37 = vmul.f32 %v995_v29, %v995_v29 }
 0x1d5   :  { %v992_v14 = vpop.f32.mrf.mxu1  ;;  %v1040_v15 = vpop.f32.mrf.mxu0 }
 0x1d6   :  { %v998_v32 = vmul.f32 %v996_v26, %v996_v26 }
 0x1d7   :  { %v993_v16 = vpop.f32.mrf.mxu1  ;;  %v1042_v17 = vpop.f32.mrf.mxu0 }
 0x1d8   :  { %v999_v42 = vadd.f32 %v998_v32, %v997_v37 }
 0x1d9   :  { %v1044_v18 = vpop.f32.mrf.mxu0 }
 0x1da   :  { %v1000_v49 = vadd.f32 %v999_v42, %v861_v45 }
 0x1db   :  { %v1045_v19 = vpop.f32.mrf.mxu0 }
 0x1e1   :  { %v1086_v27 = vpop.f32.mrf.mxu1 }
 0x1e2   :  { %v1087_v33 = vadd.f32 %v1086_v27, %v1040_v15 }
 0x1e3   :  { %v1088_v30 = vpop.f32.mrf.mxu1 }
 0x1e4   :  { %v1089_v38 = vadd.f32 %v1088_v30, %v1042_v17 }
 0x1e5   :  { %v1090_v34 = vpop.f32.mrf.mxu1  ;;  %v1127_v35 = vpop.f32.mrf.mxu0 }
 0x1e6   :  { %v1134_v39 = vadd.f32 %v1127_v35, %v1087_v33 }
 0x1e7   :  { %v1091_v40 = vpop.f32.mrf.mxu1  ;;  %v1129_v41 = vpop.f32.mrf.mxu0 }
 0x1e8   :  { %v1135_v43 = vadd.f32 %v1129_v41, %v1089_v38  ;;  %v1136_v46 = vmul.f32 %v1134_v39, %v1134_v39 }
 0x1e9   :  { %v1131_v44 = vpop.f32.mrf.mxu0 }
 0x1ea   :  { %v1137_v47 = vmul.f32 %v1135_v43, %v1135_v43 }
 0x1eb   :  { %v1132_v48 = vpop.f32.mrf.mxu0 }
 0x1ec   :  { %v1138_v50 = vadd.f32 %v1137_v47, %v1136_v46 }
 0x1ee   :  { %v1139_v52 = vadd.f32 %v1138_v50, %v1000_v49 }
 0x1f0   :  { %v1147_v53 = vmul.f32 %v1202_v51, %v1139_v52 }
 0x1f2   :  { %1148 = vst [vmem:[#allocation8] sm:$0xff] %v1147_v53 }
 0x1f3   :  { %1308 = shalt.err (!%p1305_p5)
}
 0x1f4   :  { %1158 = dma.vmem_to_hbm [thread:$0]  %s1156_s9, 128, %s1649_s4, [#allocation4]  }
 0x1f5   :  { %1321 = dma.done.wait [#allocation4], 128  }
 0x1f6   :  { %1322 = vsyncadd [#allocation4], 4294967168 }
 0x1f7   :  { %1162 = vsyncpa [#allocation3], 1 }
 0x1f8   :  { %1163 = vsyncpa [#allocation6], 1 }
 0x1f9   :  { %1164 = vsyncpa [#allocation4], 1 }

</bundles_post_ra>
